<compile_context>
chip_gen: v7x
topology: tpu7x:2x2x1
jax: 0.10.0
libtpu: 0.0.40
codegen_flags: <defaults>
</compile_context>

<pallas_src>
import functools

import jax
import jax.numpy as jnp
from jax.experimental import pallas as pl
from jax.experimental.pallas import tpu as pltpu


# -----------------------------------------------------------------------------
# Fused kernel: two lane-dense MXU passes (f32 accumulation) + one lane-dense store.
#   o = x @ Wf  +  prev @ Wbd  +  bF
# -----------------------------------------------------------------------------
def _deup_cat_kernel(x_ref, prev_ref, wf_ref, wbd_ref, bf_ref, o_ref):
    acc = jnp.dot(x_ref[...], wf_ref[...], preferred_element_type=jnp.float32)
    acc = acc + jnp.dot(prev_ref[...], wbd_ref[...], preferred_element_type=jnp.float32)
    o_ref[...] = (acc + bf_ref[...]).astype(o_ref.dtype)


def _tpu_config():
    """(physical VMEM bytes, block-diag column limit, megacore?) — best effort."""
    phys = 64 * 1024 * 1024                        # conservative default (v7x per-TC)
    try:
        phys = int(getattr(pltpu.get_tpu_info(), "vmem_capacity_bytes", phys)) or phys
    except Exception:
        pass
    kind = ""
    try:
        kind = jax.devices()[0].device_kind.lower()
    except Exception:
        pass
    newer = ("v6" in kind) or ("v7" in kind) or ("7x" in kind)
    bd_limit = 256 if newer else 128               # MXU width of one weight push
    megacore = ("v7" in kind) or ("7x" in kind)    # 2 TensorCores per chip
    return phys, bd_limit, megacore


def _pick_col_tile(cout, k8, bd_limit):
    """Largest Cout-aligned column tile that fits one MXU weight push and is either
    the full 8*Cout axis or a 128-lane multiple (BlockSpec divisibility rule)."""
    col_limit = max(bd_limit, cout)
    for m in (8, 4, 2, 1):
        tn = cout * m
        if tn <= col_limit and (tn == k8 or tn % 128 == 0):
            return tn, m
    return k8, 8                                   # fallback: no column tiling


def _pick_row_tile(m, cin, tn, act_bytes, out_bytes, vmem_limit, megacore):
    # double-buffered pipeline tiles + ~2 live (tm, tn) f32 temporaries per row
    fixed = 2 * (cin * tn * act_bytes + tn * tn * act_bytes + tn * 4)    # weights/bias
    per_row = 2 * (cin * act_bytes + tn * (act_bytes + out_bytes)) + 2 * tn * 4
    budget = max(vmem_limit - fixed - 4 * 1024 * 1024, 1 * 1024 * 1024)
    tm = min(budget // per_row, 2048)              # returns flatten past ~1-2k rows
    if megacore:
        tm = min(tm, pl.cdiv(m, 2))                # >=2 grid steps to feed both v7x TCs
    tm = min(tm, m)
    if tm >= 256:
        tm -= tm % 256
    else:
        tm = max(16, tm - tm % 16)                 # bf16 sublane pack = 16 rows
    return int(tm)


def deup_cat_forward(x_ncdhw, prev_ncdhw, params, compute_dtype=jnp.bfloat16):
    """Matches DeUp_Cat.forward(x, prev).

    x_ncdhw:    (N, Cin,  D,  H,  W)
    prev_ncdhw: (N, Cout, 2D, 2H, 2W)
    returns:    (N, Cout, 2D, 2H, 2W) float32
    """
    w1, b1, w2, b2, w3, b3 = (params[k] for k in ("w1", "b1", "w2", "b2", "w3", "b3"))
    N, Cin, D, H, W = x_ncdhw.shape
    Cout = w1.shape[0]
    K8 = 8 * Cout
    M = N * D * H * W

    phys_vmem, bd_limit, megacore = _tpu_config()
    vmem_limit = min(100 * 1024 * 1024, (phys_vmem * 3) // 4)

    # ---- fold weights once in f32, then cast to the compute dtype -----------
    w1m = jnp.transpose(w1.reshape(Cout, Cin))                       # (Cin, Cout)
    w2t = jnp.transpose(w2, (2, 3, 4, 0, 1)).reshape(8, Cout, Cout)  # k = kd*4+kh*2+kw
    w3m = jnp.transpose(w3.reshape(Cout, 2 * Cout))                  # (2*Cout, Cout)
    w3_prev, w3_y = w3m[:Cout], w3m[Cout:]

    wf = jnp.einsum("ic,kco,oq->kiq", w1m, w2t, w3_y)                # (8, Cin, Cout)
    wf = jnp.transpose(wf, (1, 0, 2)).reshape(Cin, K8)
    bf = jnp.einsum("c,kco,oq->kq", b1, w2t, w3_y)                   # (8, Cout)
    bf = bf + (b2 @ w3_y)[None, :] + b3[None, :]
    bf = bf.reshape(1, K8).astype(jnp.float32)

    # column tile + block-diagonal prev weight (8 tiny matmuls -> 1 lane-dense one)
    tn, mult = _pick_col_tile(Cout, K8, bd_limit)
    grid_n = K8 // tn
    wbd = jnp.kron(jnp.eye(mult, dtype=jnp.float32), w3_prev)        # (tn, tn)

    wf_c = wf.astype(compute_dtype)
    wbd_c = wbd.astype(compute_dtype)

    # ---- activations: channels-last rows, kernel-position-major prev --------
    # (the compute-dtype cast is fused by XLA into these layout transposes)
    x_rows = jnp.transpose(x_ncdhw, (0, 2, 3, 4, 1)).reshape(M, Cin).astype(compute_dtype)
    prev_rows = (
        prev_ncdhw.reshape(N, Cout, D, 2, H, 2, W, 2)
        .transpose(0, 2, 4, 6, 3, 5, 7, 1)                           # (N,D,H,W,kd,kh,kw,C)
        .reshape(M, K8)
        .astype(compute_dtype)
    )
    # TODO(synk): do this prev regroup (and the output scatter below) with in-kernel
    # strided DMA instead of XLA transposes to save two full HBM round-trips.

    # ---- VMEM-derived row tile ----------------------------------------------
    act_bytes = jnp.dtype(compute_dtype).itemsize
    tm = _pick_row_tile(M, Cin, tn, act_bytes, act_bytes, vmem_limit, megacore)

    grid_m = pl.cdiv(M, tm)
    m_pad = grid_m * tm
    if m_pad != M:
        # Rows are independent; pad the ragged tail instead of dropping it.
        x_rows = jnp.pad(x_rows, ((0, m_pad - M), (0, 0)))
        prev_rows = jnp.pad(prev_rows, ((0, m_pad - M), (0, 0)))

    out_rows = pl.pallas_call(
        _deup_cat_kernel,
        # compute-dtype (bf16) output: halves the write traffic of a mem-bound kernel
        out_shape=jax.ShapeDtypeStruct((m_pad, K8), compute_dtype),
        grid_spec=pltpu.PrefetchScalarGridSpec(
            num_scalar_prefetch=0,
            grid=(grid_m, grid_n),
            in_specs=[
                pl.BlockSpec((tm, Cin), lambda i, j: (i, 0)),        # x rows
                pl.BlockSpec((tm, tn), lambda i, j: (i, j)),         # prev rows (k-major)
                pl.BlockSpec((Cin, tn), lambda i, j: (0, j)),        # fused x weight
                pl.BlockSpec((tn, tn), lambda i, j: (0, 0)),         # blockdiag(W3_prev)
                pl.BlockSpec((1, tn), lambda i, j: (0, j)),          # fused bias (f32)
            ],
            out_specs=pl.BlockSpec((tm, tn), lambda i, j: (i, j)),
        ),
        compiler_params=pltpu.CompilerParams(
            dimension_semantics=("parallel", "parallel"),
            vmem_limit_bytes=int(vmem_limit),
        ),
    )(x_rows, prev_rows, wf_c, wbd_c, bf)

    # ---- scatter the 8 kernel positions back into NCDHW (f32 cast fused here) ----
    out = out_rows[:M].reshape(N, D, H, W, 2, 2, 2, Cout)
    out = jnp.transpose(out, (0, 7, 1, 4, 2, 5, 3, 6))               # (N,C,D,kd,H,kh,W,kw)
    return out.reshape(N, Cout, 2 * D, 2 * H, 2 * W).astype(jnp.float32)


def _reference_forward(x, prev, params):
    """Pure-JAX f32 reference (unfused math) for verification."""
    w1, b1, w2, b2, w3, b3 = (params[k] for k in ("w1", "b1", "w2", "b2", "w3", "b3"))
    N, Cin, D, H, W = x.shape
    Cout = w1.shape[0]
    x1 = jnp.einsum("ncdhw,oc->nodhw", x, w1.reshape(Cout, Cin)) + b1[None, :, None, None, None]
    y = jnp.einsum("ncdhw,coijk->nodihjwk", x1, w2)                  # (N,C,D,2,H,2,W,2)
    y = y.reshape(N, Cout, 2 * D, 2 * H, 2 * W) + b2[None, :, None, None, None]
    cat = jnp.concatenate([prev, y], axis=1)
    out = jnp.einsum("ncdhw,oc->nodhw", cat, w3.reshape(Cout, 2 * Cout)) + b3[None, :, None, None, None]
    return out


def init_params(key, in_channels, out_channels):
    ks = jax.random.split(key, 6)

    def u(k, shape, fan_in):
        bound = 1.0 / jnp.sqrt(fan_in)
        return jax.random.uniform(k, shape, jnp.float32, -bound, bound)

    Cin, Cout = in_channels, out_channels
    return {
        "w1": u(ks[0], (Cout, Cin, 1, 1, 1), Cin),
        "b1": u(ks[1], (Cout,), Cin),
        "w2": u(ks[2], (Cout, Cout, 2, 2, 2), Cout * 8),
        "b2": u(ks[3], (Cout,), Cout * 8),
        "w3": u(ks[4], (Cout, 2 * Cout, 1, 1, 1), 2 * Cout),
        "b3": u(ks[5], (Cout,), 2 * Cout),
    }


if __name__ == "__main__":
    key = jax.random.PRNGKey(0)
    k_x, k_prev, k_p = jax.random.split(key, 3)

    N, Cin, Cout, S = 2, 32, 16, 4            # small shapes; prev has doubled spatial dims
    x = jax.random.normal(k_x, (N, Cin, S, S, S), jnp.float32)
    prev = jax.random.normal(k_prev, (N, Cout, 2 * S, 2 * S, 2 * S), jnp.float32)
    params = init_params(k_p, Cin, Cout)

    ref = _reference_forward(x, prev, params)

    # Tight correctness check with f32 compute (verifies layout / weight folding).
    out_f32 = jax.jit(functools.partial(deup_cat_forward, compute_dtype=jnp.float32))(
        x, prev, params)
    jax.block_until_ready(out_f32)
    assert out_f32.shape == (N, Cout, 2 * S, 2 * S, 2 * S), out_f32.shape
    assert jnp.allclose(out_f32, ref, atol=1e-4, rtol=1e-4), "f32 mismatch vs reference"

    # Default (performance) path: bf16 activations/weights/output, f32 MXU accumulation.
    out = jax.jit(deup_cat_forward)(x, prev, params)
    jax.block_until_ready(out)
    assert out.shape == (N, Cout, 2 * S, 2 * S, 2 * S), out.shape
    err = float(jnp.max(jnp.abs(out - ref)))
    assert jnp.allclose(out, ref, atol=5e-2, rtol=5e-2), f"bf16 mismatch, max|diff|={err}"

    print("KERNEL_OK")
</pallas_src>

<mosaic_0001>
module attributes {stable_mosaic.version = 11 : i64} {
  func.func @_deup_cat_kernel(%arg0: i32, %arg1: i32, %arg2: memref<128x32xf32, #tpu.memory_space<vmem>>, %arg3: memref<128x128xf32, #tpu.memory_space<vmem>>, %arg4: memref<32x128xf32, #tpu.memory_space<vmem>>, %arg5: memref<128x128xf32, #tpu.memory_space<vmem>>, %arg6: memref<1x128xf32, #tpu.memory_space<vmem>>, %arg7: memref<128x128xf32, #tpu.memory_space<vmem>>) attributes {dimension_semantics = [#tpu.dimension_semantics<parallel>, #tpu.dimension_semantics<parallel>], iteration_bounds = array<i64: 1, 1>, scalar_prefetch = 0 : i64, scratch_operands = 0 : i64, tpu.core_type = #tpu.core_type<tc>, window_params = [{transform_indices = @transform_0, window_bounds = array<i64: 128, 32>}, {transform_indices = @transform_1, window_bounds = array<i64: 128, 128>}, {transform_indices = @transform_2, window_bounds = array<i64: 32, 128>}, {pipeline_mode = #tpu.pipeline_mode<synchronous>, transform_indices = @transform_3, window_bounds = array<i64: 128, 128>}, {transform_indices = @transform_4, window_bounds = array<i64: 1, 128>}, {transform_indices = @transform_5, window_bounds = array<i64: 128, 128>}]} {
    %c0 = arith.constant 0 : index
    %c0_0 = arith.constant 0 : index
    %0 = vector.load %arg2[%c0, %c0_0] : memref<128x32xf32, #tpu.memory_space<vmem>>, vector<128x32xf32>
    %c0_1 = arith.constant 0 : index
    %c0_2 = arith.constant 0 : index
    %1 = vector.load %arg4[%c0_1, %c0_2] : memref<32x128xf32, #tpu.memory_space<vmem>>, vector<32x128xf32>
    %cst = arith.constant dense<0.000000e+00> : vector<128x128xf32>
    %2 = tpu.matmul %0, %1, %cst {dimension_numbers = #tpu.dot_dimension_numbers<[1], [0], [0], [1], [0, 0, 1, 1], [], []>} : vector<128x32xf32>, vector<32x128xf32>, vector<128x128xf32> -> vector<128x128xf32>
    %c0_3 = arith.constant 0 : index
    %c0_4 = arith.constant 0 : index
    %3 = vector.load %arg3[%c0_3, %c0_4] : memref<128x128xf32, #tpu.memory_space<vmem>>, vector<128x128xf32>
    %c0_5 = arith.constant 0 : index
    %c0_6 = arith.constant 0 : index
    %4 = vector.load %arg5[%c0_5, %c0_6] : memref<128x128xf32, #tpu.memory_space<vmem>>, vector<128x128xf32>
    %cst_7 = arith.constant dense<0.000000e+00> : vector<128x128xf32>
    %5 = tpu.matmul %3, %4, %cst_7 {dimension_numbers = #tpu.dot_dimension_numbers<[1], [0], [0], [1], [0, 0, 1, 1], [], []>} : vector<128x128xf32>, vector<128x128xf32>, vector<128x128xf32> -> vector<128x128xf32>
    %6 = arith.addf %2, %5 : vector<128x128xf32>
    %c0_8 = arith.constant 0 : index
    %c0_9 = arith.constant 0 : index
    %7 = vector.load %arg6[%c0_8, %c0_9] : memref<1x128xf32, #tpu.memory_space<vmem>>, vector<1x128xf32>
    %8 = vector.broadcast %7 : vector<1x128xf32> to vector<128x128xf32>
    %9 = arith.addf %6, %8 : vector<128x128xf32>
    %c0_10 = arith.constant 0 : index
    %c0_11 = arith.constant 0 : index
    %10 = vector.load %arg7[%c0_10, %c0_11] : memref<128x128xf32, #tpu.memory_space<vmem>>, vector<128x128xf32>
    tpu.vector_store %arg7[%c0_10, %c0_11], %9 {strides = array<i32>} : memref<128x128xf32, #tpu.memory_space<vmem>>, vector<128x128xf32>,
    return
  }
  func.func @transform_0(%arg0: i32, %arg1: i32) -> (i32, i32) {
    %c0_i32 = arith.constant 0 : i32
    %c0_i32_0 = arith.constant 0 : i32
    return %arg0, %c0_i32 : i32, i32
  }
  func.func @transform_1(%arg0: i32, %arg1: i32) -> (i32, i32) {
    %c0_i32 = arith.constant 0 : i32
    return %arg0, %arg1 : i32, i32
  }
  func.func @transform_2(%arg0: i32, %arg1: i32) -> (i32, i32) {
    %c0_i32 = arith.constant 0 : i32
    %c0_i32_0 = arith.constant 0 : i32
    return %c0_i32, %arg1 : i32, i32
  }
  func.func @transform_3(%arg0: i32, %arg1: i32) -> (i32, i32) {
    %c0_i32 = arith.constant 0 : i32
    %c0_i32_0 = arith.constant 0 : i32
    %c0_i32_1 = arith.constant 0 : i32
    return %c0_i32, %c0_i32_0 : i32, i32
  }
  func.func @transform_4(%arg0: i32, %arg1: i32) -> (i32, i32) {
    %c0_i32 = arith.constant 0 : i32
    %c0_i32_0 = arith.constant 0 : i32
    return %c0_i32, %arg1 : i32, i32
  }
  func.func @transform_5(%arg0: i32, %arg1: i32) -> (i32, i32) {
    %c0_i32 = arith.constant 0 : i32
    return %arg0, %arg1 : i32, i32
  }
}

</mosaic_0001>

<bundles_post_ra>
// kernel: deup_cat_forward.1
= control target key start
LH: loop header
LB: loop body
LE: loop exit
PB: predicated region body
PF: predicated region fallthrough
CT: control target
= control target key end

     0   :  { %vm217_vm0 = vcmask 261120   ;;  %s938_s3 = inlined_call_operand.vmem [shape: f32[128,128], index: 3, kind: input, shape index: {}]   ;;  %s939_s2 = inlined_call_operand.vmem [shape: f32[32,128], index: 2, kind: input, shape index: {}]   ;;  %s940_s0 = inlined_call_operand.vmem [shape: f32[128,32], index: 0, kind: input, shape index: {}]   ;;  %s941_s1 = inlined_call_operand.vmem [shape: f32[128,128], index: 1, kind: input, shape index: {}]   ;;  %s942_s4 = inlined_call_operand.vmem [shape: f32[1,128], index: 4, kind: input, shape index: {}]   ;;  %s943_s5 = inlined_call_operand.vmem [shape: f32[128,128], index: 5, kind: output, shape index: {}]  }
   0x1   :  { %v56_v0 = vld [vmem:[%s938_s3] sm:$0xff]  ;;  %v57_v1 = vld [vmem:[%s938_s3 + $0x8] sm:$0xff]  ;;  %v58_v2 = vld [vmem:[%s938_s3 + $0x10] sm:$0xff] }
   0x2   :  { %v611_v3 = vpack.c.bf16 %v57_v1, %v56_v0  ;;  %v59_v4 = vld [vmem:[%s938_s3 + $0x18] sm:$0xff]  ;;  %v60_v6 = vld [vmem:[%s938_s3 + $0x20] sm:$0xff]  ;;  %v61_v7 = vld [vmem:[%s938_s3 + $0x28] sm:$0xff] }
   0x3   :  { %v615_v5 = vpack.c.bf16 %v59_v4, %v58_v2  ;;  %v36_v8 = vld [vmem:[%s939_s2] sm:$0xff]  ;;  %v37_v9 = vld [vmem:[%s939_s2 + $0x8] sm:$0xff]  ;;  %v619_v10 = vpack.c.bf16 %v61_v7, %v60_v6  ;;  %v38_v12 = vld [vmem:[%s939_s2 + $0x10] sm:$0xff] }
   0x4   :  { %612 = vmatprep.subr.bf16.mxu1 %v611_v3  ;;  %v643_v11 = vpack.c.bf16 %v37_v9, %v36_v8  ;;  %v39_v13 = vld [vmem:[%s939_s2 + $0x18] sm:$0xff]  ;;  %v62_v14 = vld [vmem:[%s938_s3 + $0x30] sm:$0xff]  ;;  %v20_v17 = vld [vmem:[%s940_s0] sm:$0xff] }
   0x5   :  { %614 = vmatpush3.bf16.msra.mxu1 %v611_v3  ;;  %v63_v15 = vld [vmem:[%s938_s3 + $0x38] sm:$0xff]  ;;  %v647_v16 = vpack.c.bf16 %v39_v13, %v38_v12  ;;  %587 = vmatprep.mubr.msk.f32.mxu0 %vm217_vm0, %v20_v17  ;;  %v40_v18 = vld [vmem:[%s941_s1] sm:$0xff]  ;;  %v65_v21 = vld [vmem:[%s938_s3 + $0x48] sm:$0xff] }
   0x6   :  { %616 = vmatprep.subr.bf16.mxu1 %v615_v5  ;;  %644 = vmatprep.subr.bf16.mxu0 %v643_v11  ;;  %v623_v19 = vpack.c.bf16 %v63_v15, %v62_v14  ;;  %v64_v20 = vld [vmem:[%s938_s3 + $0x40] sm:$0xff]  ;;  %v21_v22 = vld [vmem:[%s940_s0 + $0x8] sm:$0xff]  ;;  %v22_v24 = vld [vmem:[%s940_s0 + $0x10] sm:$0xff] }
   0x7   :  { %646 = vmatpush3.bf16.msra.mxu0 %v643_v11  ;;  %555 = vmatprep.mubr.f32.mxu1 %v40_v18  ;;  %v627_v23 = vpack.c.bf16 %v65_v21, %v64_v20  ;;  %v66_v25 = vld [vmem:[%s938_s3 + $0x50] sm:$0xff]  ;;  %v67_v26 = vld [vmem:[%s938_s3 + $0x58] sm:$0xff]  ;;  %v24_v29 = vld [vmem:[%s940_s0 + $0x20] sm:$0xff] }
   0x8   :  { %648 = vmatprep.subr.bf16.mxu0 %v647_v16  ;;  %v23_v27 = vld [vmem:[%s940_s0 + $0x18] sm:$0xff]  ;;  %v631_v28 = vpack.c.bf16 %v67_v26, %v66_v25  ;;  %v68_v30 = vld [vmem:[%s938_s3 + $0x60] sm:$0xff]  ;;  %v69_v31 = vld [vmem:[%s938_s3 + $0x68] sm:$0xff] }
   0x9   :  { %618 = vmatpush3.bf16.msra.mxu1 %v615_v5  ;;  %v25_v32 = vld [vmem:[%s940_s0 + $0x28] sm:$0xff]  ;;  %v635_v33 = vpack.c.bf16 %v69_v31, %v68_v30  ;;  %v26_v34 = vld [vmem:[%s940_s0 + $0x30] sm:$0xff]  ;;  %v71_v36 = vld [vmem:[%s938_s3 + $0x78] sm:$0xff] }
   0xa   :  { %620 = vmatprep.subr.bf16.mxu1 %v619_v10  ;;  %v70_v35 = vld [vmem:[%s938_s3 + $0x70] sm:$0xff]  ;;  %v27_v37 = vld [vmem:[%s940_s0 + $0x38] sm:$0xff]  ;;  %v28_v39 = vld [vmem:[%s940_s0 + $0x40] sm:$0xff] }
   0xb   :  { %650 = vmatpush3.bf16.msra.mxu0 %v647_v16  ;;  %v639_v38 = vpack.c.bf16 %v71_v36, %v70_v35  ;;  %v29_v40 = vld [vmem:[%s940_s0 + $0x48] sm:$0xff]  ;;  %v30_v41 = vld [vmem:[%s940_s0 + $0x50] sm:$0xff]  ;;  %v31_v43 = vld [vmem:[%s940_s0 + $0x58] sm:$0xff] }
   0xc   :  { %v41_v42 = vld [vmem:[%s941_s1 + $0x8] sm:$0xff]  ;;  %v42_v44 = vld [vmem:[%s941_s1 + $0x10] sm:$0xff]  ;;  %v32_v45 = vld [vmem:[%s940_s0 + $0x60] sm:$0xff] }
   0xd   :  { %622 = vmatpush3.bf16.msra.mxu1 %v619_v10  ;;  %v43_v46 = vld [vmem:[%s941_s1 + $0x18] sm:$0xff]  ;;  %v33_v47 = vld [vmem:[%s940_s0 + $0x68] sm:$0xff]  ;;  %v44_v48 = vld [vmem:[%s941_s1 + $0x20] sm:$0xff] }
   0xe   :  { %624 = vmatprep.subr.bf16.mxu1 %v623_v19  ;;  %588 = vmatmul.mubr.msk.f32.vlgmr.msra.gmra.mrb[0].mxu0 %vm217_vm0, %v21_v22  ;;  %v34_v49 = vld [vmem:[%s940_s0 + $0x70] sm:$0xff]  ;;  %v45_v50 = vld [vmem:[%s941_s1 + $0x28] sm:$0xff]  ;;  %v35_v51 = vld [vmem:[%s940_s0 + $0x78] sm:$0xff] }
   0xf   :  { %590 = vmatprep.mubr.msk.f32.mxu0 %vm217_vm0, %v22_v24  ;;  %v46_v52 = vld [vmem:[%s941_s1 + $0x30] sm:$0xff]  ;;  %v47_v53 = vld [vmem:[%s941_s1 + $0x38] sm:$0xff]  ;;  %v48_v54 = vld [vmem:[%s941_s1 + $0x40] sm:$0xff] }
  0x10   :  { %v49_v55 = vld [vmem:[%s941_s1 + $0x48] sm:$0xff]  ;;  %v50_v56 = vld [vmem:[%s941_s1 + $0x50] sm:$0xff]  ;;  %v51_v57 = vld [vmem:[%s941_s1 + $0x58] sm:$0xff] }
  0x11   :  { %626 = vmatpush3.bf16.msra.mxu1 %v623_v19  ;;  %v52_v58 = vld [vmem:[%s941_s1 + $0x60] sm:$0xff]  ;;  %v53_v59 = vld [vmem:[%s941_s1 + $0x68] sm:$0xff]  ;;  %v54_v60 = vld [vmem:[%s941_s1 + $0x70] sm:$0xff] }
  0x12   :  { %628 = vmatprep.subr.bf16.mxu1 %v627_v23  ;;  %591 = vmatmul.mubr.msk.f32.gmra.mrb[2].mxu0 %vm217_vm0, %v23_v27  ;;  %v55_v61 = vld [vmem:[%s941_s1 + $0x78] sm:$0xff]  ;;  %v872_v9 = vld [vmem:[%s942_s4] ss:$0 sm:$0xff] }
  0x13   :  { %593 = vmatprep.mubr.msk.f32.mxu0 %vm217_vm0, %v24_v29 }
  0x15   :  { %630 = vmatpush3.bf16.msra.mxu1 %v627_v23 }
  0x16   :  { %632 = vmatprep.subr.bf16.mxu1 %v631_v28  ;;  %594 = vmatmul.mubr.msk.f32.gmra.mrb[4].mxu0 %vm217_vm0, %v25_v32 }
  0x17   :  { %596 = vmatprep.mubr.msk.f32.mxu0 %vm217_vm0, %v26_v34 }
  0x19   :  { %634 = vmatpush3.bf16.msra.mxu1 %v631_v28 }
  0x1a   :  { %636 = vmatprep.subr.bf16.mxu1 %v635_v33  ;;  %597 = vmatmul.mubr.msk.f32.gmra.mrb[6].mxu0 %vm217_vm0, %v27_v37 }
  0x1b   :  { %599 = vmatprep.mubr.msk.f32.mxu0 %vm217_vm0, %v28_v39 }
  0x1d   :  { %638 = vmatpush3.bf16.msra.mxu1 %v635_v33 }
  0x1e   :  { %640 = vmatprep.subr.bf16.mxu1 %v639_v38  ;;  %600 = vmatmul.mubr.msk.f32.gmra.mrb[8].mxu0 %vm217_vm0, %v29_v40 }
  0x1f   :  { %602 = vmatprep.mubr.msk.f32.mxu0 %vm217_vm0, %v30_v41 }
  0x21   :  { %642 = vmatpush3.bf16.msra.mxu1 %v639_v38 }
  0x22   :  { %603 = vmatmul.mubr.msk.f32.gmra.mrb[10].mxu0 %vm217_vm0, %v31_v43 }
  0x23   :  { %605 = vmatprep.mubr.msk.f32.mxu0 %vm217_vm0, %v32_v45 }
  0x24   :  { %556 = vmatmul.mubr.f32.vlgmr.msra.gmra.mrb[0].mxu1 %v41_v42 }
  0x25   :  { %558 = vmatprep.mubr.f32.mxu1 %v42_v44 }
  0x26   :  { %606 = vmatmul.mubr.msk.f32.gmra.mrb[12].mxu0 %vm217_vm0, %v33_v47 }
  0x27   :  { %608 = vmatprep.mubr.msk.f32.mxu0 %vm217_vm0, %v34_v49 }
  0x28   :  { %559 = vmatmul.mubr.f32.gmra.mrb[2].mxu1 %v43_v46 }
  0x29   :  { %561 = vmatprep.mubr.f32.mxu1 %v44_v48 }
  0x2a   :  { %609 = vmatmul.mubr.msk.f32.gmra.mrb[14].mxu0 %vm217_vm0, %v35_v51 }
  0x2c   :  { %562 = vmatmul.mubr.f32.gmra.mrb[4].mxu1 %v45_v50 }
  0x2d   :  { %564 = vmatprep.mubr.f32.mxu1 %v46_v52 }
  0x30   :  { %565 = vmatmul.mubr.f32.gmra.mrb[6].mxu1 %v47_v53 }
  0x31   :  { %567 = vmatprep.mubr.f32.mxu1 %v48_v54 }
  0x34   :  { %568 = vmatmul.mubr.f32.gmra.mrb[8].mxu1 %v49_v55 }
  0x35   :  { %570 = vmatprep.mubr.f32.mxu1 %v50_v56 }
  0x38   :  { %571 = vmatmul.mubr.f32.gmra.mrb[10].mxu1 %v51_v57 }
  0x39   :  { %573 = vmatprep.mubr.f32.mxu1 %v52_v58 }
  0x3c   :  { %574 = vmatmul.mubr.f32.gmra.mrb[12].mxu1 %v53_v59 }
  0x3d   :  { %576 = vmatprep.mubr.f32.mxu1 %v54_v60 }
  0x40   :  { %577 = vmatmul.mubr.f32.gmra.mrb[14].mxu1 %v55_v61 }
  0xe1   :  { %v589_v62 = vpop.f32.mrb[0].mxu0 }
  0xe2   :  { %v332_v63 = vpop.f32.mrb[1].mxu0 }
  0xe5   :  { %v592_v0 = vpop.f32.mrb[2].mxu0 }
  0xe6   :  { %v342_v1 = vpop.f32.mrb[3].mxu0 }
  0xe9   :  { %v595_v2 = vpop.f32.mrb[4].mxu0 }
  0xea   :  { %v352_v3 = vpop.f32.mrb[5].mxu0 }
  0xed   :  { %v598_v4 = vpop.f32.mrb[6].mxu0 }
  0xee   :  { %v362_v5 = vpop.f32.mrb[7].mxu0 }
  0xf1   :  { %v601_v6 = vpop.f32.mrb[8].mxu0 }
  0xf2   :  { %v372_v7 = vpop.f32.mrb[9].mxu0 }
  0xf5   :  { %v604_v10 = vpop.f32.mrb[10].mxu0 }
  0xf6   :  { %v382_v13 = vpop.f32.mrb[11].mxu0 }
  0xf7   :  { %v557_v8 = vpop.f32.mrb[0].mxu1 }
  0xf8   :  { %v338_v11 = vadd.f32 %v589_v62, %v557_v8  ;;  %v138_v12 = vpop.f32.mrb[1].mxu1 }
  0xf9   :  { %v333_v14 = vadd.f32 %v332_v63, %v138_v12  ;;  %v607_v18 = vpop.f32.mrb[12].mxu0 }
  0xfa   :  { %v419_v15 = vadd.f32 %v872_v9, %v338_v11  ;;  %v392_v21 = vpop.f32.mrb[13].mxu0 }
  0xfb   :  { %v418_v16 = vadd.f32 %v872_v9, %v333_v14  ;;  %v560_v17 = vpop.f32.mrb[2].mxu1 }
  0xfc   :  { %435 = vst [vmem:[%s943_s5 + $0x8] sm:$0xff] %v419_v15  ;;  %v348_v19 = vadd.f32 %v592_v0, %v560_v17  ;;  %v148_v20 = vpop.f32.mrb[3].mxu1 }
  0xfd   :  { %434 = vst [vmem:[%s943_s5] sm:$0xff] %v418_v16  ;;  %v343_v22 = vadd.f32 %v342_v1, %v148_v20  ;;  %v610_v26 = vpop.f32.mrb[14].mxu0 }
  0xfe   :  { %v421_v23 = vadd.f32 %v872_v9, %v348_v19  ;;  %v402_v29 = vpop.f32.mrb[15].mxu0 }
  0xff   :  { %v420_v24 = vadd.f32 %v872_v9, %v343_v22  ;;  %v563_v25 = vpop.f32.mrb[4].mxu1 }
 0x100   :  { %437 = vst [vmem:[%s943_s5 + $0x18] sm:$0xff] %v421_v23  ;;  %v358_v27 = vadd.f32 %v595_v2, %v563_v25  ;;  %v158_v28 = vpop.f32.mrb[5].mxu1 }
 0x101   :  { %436 = vst [vmem:[%s943_s5 + $0x10] sm:$0xff] %v420_v24  ;;  %v353_v30 = vadd.f32 %v352_v3, %v158_v28 }
 0x102   :  { %v423_v31 = vadd.f32 %v872_v9, %v358_v27 }
 0x103   :  { %v422_v32 = vadd.f32 %v872_v9, %v353_v30  ;;  %v566_v33 = vpop.f32.mrb[6].mxu1 }
 0x104   :  { %439 = vst [vmem:[%s943_s5 + $0x28] sm:$0xff] %v423_v31  ;;  %v368_v34 = vadd.f32 %v598_v4, %v566_v33  ;;  %v168_v35 = vpop.f32.mrb[7].mxu1 }
 0x105   :  { %438 = vst [vmem:[%s943_s5 + $0x20] sm:$0xff] %v422_v32  ;;  %v363_v36 = vadd.f32 %v362_v5, %v168_v35 }
 0x106   :  { %v425_v37 = vadd.f32 %v872_v9, %v368_v34 }
 0x107   :  { %v424_v38 = vadd.f32 %v872_v9, %v363_v36  ;;  %v569_v39 = vpop.f32.mrb[8].mxu1 }
 0x108   :  { %441 = vst [vmem:[%s943_s5 + $0x38] sm:$0xff] %v425_v37  ;;  %v378_v40 = vadd.f32 %v601_v6, %v569_v39  ;;  %v178_v41 = vpop.f32.mrb[9].mxu1 }
 0x109   :  { %440 = vst [vmem:[%s943_s5 + $0x30] sm:$0xff] %v424_v38  ;;  %v373_v42 = vadd.f32 %v372_v7, %v178_v41 }
 0x10a   :  { %v427_v43 = vadd.f32 %v872_v9, %v378_v40 }
 0x10b   :  { %v426_v44 = vadd.f32 %v872_v9, %v373_v42  ;;  %v572_v45 = vpop.f32.mrb[10].mxu1 }
 0x10c   :  { %443 = vst [vmem:[%s943_s5 + $0x48] sm:$0xff] %v427_v43  ;;  %v388_v46 = vadd.f32 %v604_v10, %v572_v45  ;;  %v188_v47 = vpop.f32.mrb[11].mxu1 }
 0x10d   :  { %442 = vst [vmem:[%s943_s5 + $0x40] sm:$0xff] %v426_v44  ;;  %v383_v48 = vadd.f32 %v382_v13, %v188_v47 }
 0x10e   :  { %v429_v49 = vadd.f32 %v872_v9, %v388_v46 }
 0x10f   :  { %v428_v50 = vadd.f32 %v872_v9, %v383_v48  ;;  %v575_v51 = vpop.f32.mrb[12].mxu1 }
 0x110   :  { %445 = vst [vmem:[%s943_s5 + $0x58] sm:$0xff] %v429_v49  ;;  %v398_v52 = vadd.f32 %v607_v18, %v575_v51  ;;  %v198_v53 = vpop.f32.mrb[13].mxu1 }
 0x111   :  { %444 = vst [vmem:[%s943_s5 + $0x50] sm:$0xff] %v428_v50  ;;  %v393_v54 = vadd.f32 %v392_v21, %v198_v53 }
 0x112   :  { %v431_v55 = vadd.f32 %v872_v9, %v398_v52 }
 0x113   :  { %v430_v56 = vadd.f32 %v872_v9, %v393_v54  ;;  %v578_v57 = vpop.f32.mrb[14].mxu1 }
 0x114   :  { %447 = vst [vmem:[%s943_s5 + $0x68] sm:$0xff] %v431_v55  ;;  %v408_v58 = vadd.f32 %v610_v26, %v578_v57  ;;  %v208_v59 = vpop.f32.mrb[15].mxu1 }
 0x115   :  { %446 = vst [vmem:[%s943_s5 + $0x60] sm:$0xff] %v430_v56  ;;  %v403_v60 = vadd.f32 %v402_v29, %v208_v59 }
 0x116   :  { %v433_v61 = vadd.f32 %v872_v9, %v408_v58 }
 0x117   :  { %v432_v62 = vadd.f32 %v872_v9, %v403_v60 }
 0x118   :  { %449 = vst [vmem:[%s943_s5 + $0x78] sm:$0xff] %v433_v61 }
 0x119   :  { %448 = vst [vmem:[%s943_s5 + $0x70] sm:$0xff] %v432_v62 }

</bundles_post_ra>
